<compile_context>
chip_gen: v6e
topology: v6e:2x2x1
jax: 0.10.0
libtpu: 0.0.40
codegen_flags: <defaults>
</compile_context>

<pallas_src>
import functools
import math

import jax
import jax.numpy as jnp
from jax import lax
from jax.experimental import pallas as pl
from jax.experimental.pallas import tpu as pltpu


# ----------------------------- fused Pallas kernel -----------------------------

def _fused_forward_kernel(x_ref, q_ref, wkv_ref, bkv_ref, mask_ref,
                          wop_ref, bop_ref, out_ref, *, nhead, pos_len):
    Bt, P, H = x_ref.shape
    Lt = q_ref.shape[0]

    # Hoist shared loads once per grid step.
    q = q_ref[...]        # (Lt, H)        pre-scaled, precomputed Q projection
    mask = mask_ref[...]  # (nhead*P, H)   block-diagonal head mask (0/1)
    wop = wop_ref[...]    # (H, E)         wo @ wproj
    bop = bop_ref[...]    # (1, E)

    # K/V projection for the whole batch block in one lane-dense matmul.
    # props_pe is already folded into bkv_ref, so no x + pe add is needed.
    x2 = x_ref[...].reshape(Bt * P, H)                       # layout no-op
    kv = jnp.dot(x2, wkv_ref[...], preferred_element_type=jnp.float32)
    kv = kv.reshape(Bt, P, 2 * H) + bkv_ref[...][None]       # (Bt, P, 2H)

    for b in range(Bt):                                      # Bt is small & static
        k = kv[b, :, :H]                                     # (P, H)
        v = kv[b, :, H:]                                     # (P, H)

        # Block-diagonal K / V: tile over heads and zero cross-head terms.
        kbd = jnp.tile(k, (nhead, 1)) * mask                 # (nhead*P, H)
        vbd = jnp.tile(v, (nhead, 1)) * mask                 # (nhead*P, H)

        # All-heads scores in ONE matmul (contraction over the full H lanes;
        # the mask removes cross-head contributions).  Softmax scale is folded
        # into q already.
        s = lax.dot_general(q, kbd, (((1,), (1,)), ((), ())),
                            preferred_element_type=jnp.float32)  # (Lt, nhead*P)
        # Subtracting the per-row (all-heads) max is valid for the per-segment
        # softmax: any per-row constant cancels in exp/denominator.
        s = s - jnp.max(s, axis=-1, keepdims=True)
        e = jnp.exp(s)

        # Context (unnormalized) and per-head softmax denominators, each as a
        # single full-lane matmul; normalize afterwards on the EUP.
        ctx_un = jnp.dot(e, vbd, preferred_element_type=jnp.float32)   # (Lt, H)
        denom = jnp.dot(e, mask, preferred_element_type=jnp.float32)   # (Lt, H)
        ctx = ctx_un * pl.reciprocal(denom, approx=True)

        # Fused attention-out linear + proj linear: one (Lt, H) @ (H, E).
        out = jnp.dot(ctx, wop, preferred_element_type=jnp.float32) + bop  # (Lt, E)

        # Householder: H = I - 2 u u^T applied analytically, per row.
        pos = out[:pos_len]
        neg = out[pos_len:]
        vsum = pos + neg
        vnorm = jnp.sqrt(jnp.sum(vsum * vsum, axis=-1, keepdims=True))
        u = vsum * pl.reciprocal(vnorm + 1e-8, approx=True)
        u2 = jnp.concatenate([u, u], axis=0)                 # paired rows share u
        out_ref[b] = out - 2.0 * u2 * jnp.sum(u2 * out, axis=-1, keepdims=True)


def fused_forward(x, q_s, wkv, bkv_full, mask, wop, bop, *, nhead, pos_len,
                  batch_block=8):
    """Single fused pallas_call over batch blocks.  Returns (B, Lt, E)."""
    B, P, H = x.shape
    Lt = q_s.shape[0]
    E = wop.shape[1]

    # Largest divisor of B that is <= batch_block (whole batch for tiny B).
    Bt = 1
    for d in range(min(batch_block, B), 0, -1):
        if B % d == 0:
            Bt = d
            break
    n_blocks = B // Bt

    NP = nhead * P
    flops = 2 * B * (P * H * 2 * H          # KV projection
                     + Lt * H * NP          # scores
                     + 2 * Lt * NP * H      # ctx + denom
                     + Lt * H * E)          # fused out/proj linear
    transcendentals = B * Lt * (NP + H + E)
    bytes_accessed = 4 * (x.size + q_s.size + wkv.size + bkv_full.size
                          + mask.size + wop.size + bop.size + B * Lt * E)

    def bcast(shape):
        nd = len(shape)
        return pl.BlockSpec(shape, lambda g, _nd=nd: (0,) * _nd)

    kernel = functools.partial(_fused_forward_kernel,
                               nhead=nhead, pos_len=pos_len)
    return pl.pallas_call(
        kernel,
        grid=(n_blocks,),
        in_specs=[
            pl.BlockSpec((Bt, P, H), lambda g: (g, 0, 0)),   # x
            bcast((Lt, H)),                                  # q (pre-projected, scaled)
            bcast((H, 2 * H)),                               # wk|wv
            bcast((P, 2 * H)),                               # pe @ wkv + bk|bv
            bcast((NP, H)),                                  # block-diag head mask
            bcast((H, E)),                                   # wo @ wproj
            bcast((1, E)),                                   # bo @ wproj + bproj
        ],
        out_specs=pl.BlockSpec((Bt, Lt, E), lambda g: (g, 0, 0)),
        out_shape=jax.ShapeDtypeStruct((B, Lt, E), jnp.float32),
        compiler_params=pltpu.CompilerParams(
            dimension_semantics=("parallel",)),
        cost_estimate=pl.CostEstimate(
            flops=flops, transcendentals=transcendentals,
            bytes_accessed=bytes_accessed),
    )(x, q_s, wkv, bkv_full, mask, wop, bop)


# ----------------------------- Module wrapper -----------------------------

class QKVPosNegOrthAfterPromptG:
    def __init__(self, key, embed_num, embed_dim, prompt_num_s, prompt_num_m,
                 proj_hidd_dim, pos_promptLen=1, neg_promptLen=1,
                 pos_promptLayers=12, neg_promptLayers=12, nhead=8):
        self.embed_num = embed_num
        self.embed_dim = embed_dim
        self.prompt_num = prompt_num_s + prompt_num_m
        self.H = proj_hidd_dim
        self.nhead = nhead
        assert proj_hidd_dim % nhead == 0
        self.pos_len_per_layer = pos_promptLen
        self.neg_len_per_layer = neg_promptLen
        self.pos_layers = pos_promptLayers
        self.neg_layers = neg_promptLayers
        self.pos_len = pos_promptLen * pos_promptLayers
        self.neg_len = neg_promptLen * neg_promptLayers
        # Householder pairs pos/neg rows elementwise (as in the torch module,
        # which implicitly requires equal lengths).
        assert self.pos_len == self.neg_len

        H, E, P = self.H, self.embed_dim, self.prompt_num
        hd = H // nhead
        keys = jax.random.split(key, 10)

        def lin_init(k, din, dout):
            kw, kb = jax.random.split(k)
            scale = 1.0 / math.sqrt(din)
            w = jax.random.normal(kw, (din, dout), jnp.float32) * scale
            b = jax.random.normal(kb, (dout,), jnp.float32) * scale
            return w, b

        # shared CrossAttention (only self.cross_attention is used in forward)
        wq, bq = lin_init(keys[0], H, H)
        wk, bk = lin_init(keys[1], H, H)
        wv, bv = lin_init(keys[2], H, H)
        wo, bo = lin_init(keys[3], H, H)
        wproj, bproj = lin_init(keys[4], H, E)

        pos_emb = jax.random.normal(keys[5], (1, self.pos_len, H), jnp.float32) * 0.02
        neg_emb = jax.random.normal(keys[6], (1, self.neg_len, H), jnp.float32) * 0.02
        props_pe = jax.random.normal(keys[7], (1, P, H), jnp.float32) * 0.02

        # raw parameters (kept for reference / training-style access)
        self.params = dict(
            wq=wq, bq=bq, wk=wk, bk=bk, wv=wv, bv=bv, wo=wo, bo=bo,
            wproj=wproj, bproj=bproj,
            cls_token=jnp.zeros((1, 1, H), jnp.float32),          # unused in forward
            pos_prompt_embeddings=pos_emb,
            neg_prompt_embeddings=neg_emb,
            props_pe=props_pe,
        )

        # --- pre-folded operands for the fused kernel (outside the hot path) ---
        scale = 1.0 / math.sqrt(hd)            # softmax scale folded into Q
        qemb = jnp.concatenate([pos_emb[0], neg_emb[0]], axis=0)       # (Lt, H)
        q_s = (qemb @ wq + bq[None, :]) * scale                        # (Lt, H)
        wkv = jnp.concatenate([wk, wv], axis=1)                        # (H, 2H)
        bkv = jnp.concatenate([bk, bv], axis=0)                        # (2H,)
        bkv_full = props_pe[0] @ wkv + bkv[None, :]                    # (P, 2H) pe folded in
        wop = wo @ wproj                                               # (H, E)
        bop = (bo @ wproj + bproj).reshape(1, E)
        row_head = jnp.arange(nhead * P) // P
        col_head = jnp.arange(H) // hd
        mask = (row_head[:, None] == col_head[None, :]).astype(jnp.float32)

        self.fused = dict(q_s=q_s, wkv=wkv, bkv_full=bkv_full, mask=mask,
                          wop=wop, bop=bop)

    def __call__(self, x):
        # TODO(synk): the torch reference applies self.proj to the *tuple*
        # (output, attn_weights) returned by CrossAttention (would raise); we
        # use the attention output (element 0), the only well-defined reading.
        f = self.fused
        out = fused_forward(
            x, f['q_s'], f['wkv'], f['bkv_full'], f['mask'], f['wop'], f['bop'],
            nhead=self.nhead, pos_len=self.pos_len)

        E = self.embed_dim
        pos = out[:, :self.pos_len, :]
        neg = out[:, self.pos_len:, :]
        if self.pos_layers > 1:
            pos = pos.reshape(-1, self.pos_layers, self.pos_len_per_layer, E)
        if self.neg_layers > 1:
            neg = neg.reshape(-1, self.neg_layers, self.neg_len_per_layer, E)
        return pos, neg


# --------------------------------- main ---------------------------------

if __name__ == "__main__":
    key = jax.random.PRNGKey(0)
    B = 2
    embed_dim = 32          # E
    proj_hidd_dim = 64      # H
    prompt_num_s, prompt_num_m = 4, 4
    nhead = 8

    model = QKVPosNegOrthAfterPromptG(
        key, embed_num=10, embed_dim=embed_dim,
        prompt_num_s=prompt_num_s, prompt_num_m=prompt_num_m,
        proj_hidd_dim=proj_hidd_dim, nhead=nhead)

    xkey = jax.random.fold_in(key, 123)
    x = jax.random.normal(
        xkey, (B, prompt_num_s + prompt_num_m, proj_hidd_dim), jnp.float32)

    pos, neg = model(x)
    jax.block_until_ready((pos, neg))

    assert pos.shape == (B, 12, 1, embed_dim), pos.shape
    assert neg.shape == (B, 12, 1, embed_dim), neg.shape
    assert bool(jnp.all(jnp.isfinite(pos))) and bool(jnp.all(jnp.isfinite(neg)))
    print("KERNEL_OK")
</pallas_src>

<mosaic_0001>
module attributes {stable_mosaic.version = 11 : i64} {
  func.func @_fused_forward_kernel(%arg0: i32, %arg1: memref<2x8x64xf32, #tpu.memory_space<vmem>>, %arg2: memref<24x64xf32, #tpu.memory_space<vmem>>, %arg3: memref<64x128xf32, #tpu.memory_space<vmem>>, %arg4: memref<8x128xf32, #tpu.memory_space<vmem>>, %arg5: memref<64x64xf32, #tpu.memory_space<vmem>>, %arg6: memref<64x32xf32, #tpu.memory_space<vmem>>, %arg7: memref<1x32xf32, #tpu.memory_space<vmem>>, %arg8: memref<2x24x32xf32, #tpu.memory_space<vmem>>) attributes {dimension_semantics = [#tpu.dimension_semantics<parallel>], iteration_bounds = array<i64: 1>, scalar_prefetch = 0 : i64, scratch_operands = 0 : i64, tpu.core_type = #tpu.core_type<tc>, window_params = [{transform_indices = @transform_0, window_bounds = array<i64: 2, 8, 64>}, {pipeline_mode = #tpu.pipeline_mode<synchronous>, transform_indices = @transform_1, window_bounds = array<i64: 24, 64>}, {pipeline_mode = #tpu.pipeline_mode<synchronous>, transform_indices = @transform_2, window_bounds = array<i64: 64, 128>}, {pipeline_mode = #tpu.pipeline_mode<synchronous>, transform_indices = @transform_3, window_bounds = array<i64: 8, 128>}, {pipeline_mode = #tpu.pipeline_mode<synchronous>, transform_indices = @transform_4, window_bounds = array<i64: 64, 64>}, {pipeline_mode = #tpu.pipeline_mode<synchronous>, transform_indices = @transform_5, window_bounds = array<i64: 64, 32>}, {pipeline_mode = #tpu.pipeline_mode<synchronous>, transform_indices = @transform_6, window_bounds = array<i64: 1, 32>}, {transform_indices = @transform_7, window_bounds = array<i64: 2, 24, 32>}]} {
    %c0 = arith.constant 0 : index
    %c0_0 = arith.constant 0 : index
    %0 = vector.load %arg2[%c0, %c0_0] : memref<24x64xf32, #tpu.memory_space<vmem>>, vector<24x64xf32>
    %c0_1 = arith.constant 0 : index
    %c0_2 = arith.constant 0 : index
    %1 = vector.load %arg5[%c0_1, %c0_2] : memref<64x64xf32, #tpu.memory_space<vmem>>, vector<64x64xf32>
    %c0_3 = arith.constant 0 : index
    %c0_4 = arith.constant 0 : index
    %2 = vector.load %arg6[%c0_3, %c0_4] : memref<64x32xf32, #tpu.memory_space<vmem>>, vector<64x32xf32>
    %c0_5 = arith.constant 0 : index
    %c0_6 = arith.constant 0 : index
    %3 = vector.load %arg7[%c0_5, %c0_6] : memref<1x32xf32, #tpu.memory_space<vmem>>, vector<1x32xf32>
    %c0_7 = arith.constant 0 : index
    %c0_8 = arith.constant 0 : index
    %c0_9 = arith.constant 0 : index
    %4 = vector.load %arg1[%c0_7, %c0_8, %c0_9] : memref<2x8x64xf32, #tpu.memory_space<vmem>>, vector<2x8x64xf32>
    %5 = vector.shape_cast %4 : vector<2x8x64xf32> to vector<16x64xf32>
    %c0_10 = arith.constant 0 : index
    %c0_11 = arith.constant 0 : index
    %6 = vector.load %arg3[%c0_10, %c0_11] : memref<64x128xf32, #tpu.memory_space<vmem>>, vector<64x128xf32>
    %cst = arith.constant dense<0.000000e+00> : vector<16x128xf32>
    %7 = tpu.matmul %5, %6, %cst {dimension_numbers = #tpu.dot_dimension_numbers<[1], [0], [0], [1], [0, 0, 1, 1], [], []>} : vector<16x64xf32>, vector<64x128xf32>, vector<16x128xf32> -> vector<16x128xf32>
    %8 = vector.shape_cast %7 : vector<16x128xf32> to vector<2x8x128xf32>
    %c0_12 = arith.constant 0 : index
    %c0_13 = arith.constant 0 : index
    %9 = vector.load %arg4[%c0_12, %c0_13] : memref<8x128xf32, #tpu.memory_space<vmem>>, vector<8x128xf32>
    %10 = vector.shape_cast %9 : vector<8x128xf32> to vector<1x8x128xf32>
    %11 = vector.broadcast %10 : vector<1x8x128xf32> to vector<2x8x128xf32>
    %12 = arith.addf %8, %11 : vector<2x8x128xf32>
    %13 = vector.extract_strided_slice %12 {offsets = [0, 0, 0], sizes = [1, 8, 64], strides = [1, 1, 1]} : vector<2x8x128xf32> to vector<1x8x64xf32>
    %14 = vector.shape_cast %13 : vector<1x8x64xf32> to vector<8x64xf32>
    %15 = vector.extract_strided_slice %12 {offsets = [0, 0, 64], sizes = [1, 8, 64], strides = [1, 1, 1]} : vector<2x8x128xf32> to vector<1x8x64xf32>
    %16 = vector.shape_cast %15 : vector<1x8x64xf32> to vector<8x64xf32>
    %17 = tpu.concatenate %14, %14, %14, %14, %14, %14, %14, %14 in 0 : vector<8x64xf32>, vector<8x64xf32>, vector<8x64xf32>, vector<8x64xf32>, vector<8x64xf32>, vector<8x64xf32>, vector<8x64xf32>, vector<8x64xf32> -> vector<64x64xf32>
    %18 = arith.mulf %17, %1 : vector<64x64xf32>
    %19 = tpu.concatenate %16, %16, %16, %16, %16, %16, %16, %16 in 0 : vector<8x64xf32>, vector<8x64xf32>, vector<8x64xf32>, vector<8x64xf32>, vector<8x64xf32>, vector<8x64xf32>, vector<8x64xf32>, vector<8x64xf32> -> vector<64x64xf32>
    %20 = arith.mulf %19, %1 : vector<64x64xf32>
    %cst_14 = arith.constant dense<0.000000e+00> : vector<24x64xf32>
    %21 = tpu.matmul %0, %18, %cst_14 {dimension_numbers = #tpu.dot_dimension_numbers<[1], [1], [0], [0], [0, 0, 1, 0], [], []>} : vector<24x64xf32>, vector<64x64xf32>, vector<24x64xf32> -> vector<24x64xf32>
    %cst_15 = arith.constant dense<0xFF800000> : vector<24xf32>
    %22 = vector.multi_reduction <maximumf>, %21, %cst_15 [1] : vector<24x64xf32> to vector<24xf32>
    %23 = vector.shape_cast %22 : vector<24xf32> to vector<24x1xf32>
    %24 = vector.broadcast %23 : vector<24x1xf32> to vector<24x64xf32>
    %25 = arith.subf %21, %24 : vector<24x64xf32>
    %26 = math.exp %25 : vector<24x64xf32>
    %cst_16 = arith.constant dense<0.000000e+00> : vector<24x64xf32>
    %27 = tpu.matmul %26, %20, %cst_16 {dimension_numbers = #tpu.dot_dimension_numbers<[1], [0], [0], [1], [0, 0, 1, 1], [], []>} : vector<24x64xf32>, vector<64x64xf32>, vector<24x64xf32> -> vector<24x64xf32>
    %cst_17 = arith.constant dense<0.000000e+00> : vector<24x64xf32>
    %28 = tpu.matmul %26, %1, %cst_17 {dimension_numbers = #tpu.dot_dimension_numbers<[1], [0], [0], [1], [0, 0, 1, 1], [], []>} : vector<24x64xf32>, vector<64x64xf32>, vector<24x64xf32> -> vector<24x64xf32>
    %29 = tpu.reciprocal %28 {approx = true} : vector<24x64xf32> -> vector<24x64xf32>
    %30 = arith.mulf %27, %29 : vector<24x64xf32>
    %cst_18 = arith.constant dense<0.000000e+00> : vector<24x32xf32>
    %31 = tpu.matmul %30, %2, %cst_18 {dimension_numbers = #tpu.dot_dimension_numbers<[1], [0], [0], [1], [0, 0, 1, 1], [], []>} : vector<24x64xf32>, vector<64x32xf32>, vector<24x32xf32> -> vector<24x32xf32>
    %32 = vector.broadcast %3 : vector<1x32xf32> to vector<24x32xf32>
    %33 = arith.addf %31, %32 : vector<24x32xf32>
    %34 = vector.extract_strided_slice %33 {offsets = [0, 0], sizes = [12, 32], strides = [1, 1]} : vector<24x32xf32> to vector<12x32xf32>
    %35 = vector.extract_strided_slice %33 {offsets = [12, 0], sizes = [12, 32], strides = [1, 1]} : vector<24x32xf32> to vector<12x32xf32>
    %36 = arith.addf %34, %35 : vector<12x32xf32>
    %37 = arith.mulf %36, %36 : vector<12x32xf32>
    %cst_19 = arith.constant dense<0.000000e+00> : vector<12xf32>
    %38 = vector.multi_reduction <add>, %37, %cst_19 [1] : vector<12x32xf32> to vector<12xf32>
    %39 = vector.shape_cast %38 : vector<12xf32> to vector<12x1xf32>
    %40 = math.sqrt %39 : vector<12x1xf32>
    %cst_20 = arith.constant 9.99999993E-9 : f32
    %41 = vector.broadcast %cst_20 : f32 to vector<12x1xf32>
    %42 = arith.addf %40, %41 : vector<12x1xf32>
    %43 = tpu.reciprocal %42 {approx = true} : vector<12x1xf32> -> vector<12x1xf32>
    %44 = vector.broadcast %43 : vector<12x1xf32> to vector<12x32xf32>
    %45 = arith.mulf %36, %44 : vector<12x32xf32>
    %46 = tpu.concatenate %45, %45 in 0 : vector<12x32xf32>, vector<12x32xf32> -> vector<24x32xf32>
    %cst_21 = arith.constant 2.000000e+00 : f32
    %47 = vector.broadcast %cst_21 : f32 to vector<24x32xf32>
    %48 = arith.mulf %47, %46 : vector<24x32xf32>
    %49 = arith.mulf %46, %33 : vector<24x32xf32>
    %cst_22 = arith.constant dense<0.000000e+00> : vector<24xf32>
    %50 = vector.multi_reduction <add>, %49, %cst_22 [1] : vector<24x32xf32> to vector<24xf32>
    %51 = vector.shape_cast %50 : vector<24xf32> to vector<24x1xf32>
    %52 = vector.broadcast %51 : vector<24x1xf32> to vector<24x32xf32>
    %53 = arith.mulf %48, %52 : vector<24x32xf32>
    %54 = arith.subf %33, %53 : vector<24x32xf32>
    %c0_23 = arith.constant 0 : index
    %c0_24 = arith.constant 0 : index
    %c0_25 = arith.constant 0 : index
    %55 = vector.load %arg8[%c0_23, %c0_24, %c0_25] : memref<2x24x32xf32, #tpu.memory_space<vmem>>, vector<1x24x32xf32>
    %56 = vector.shape_cast %55 : vector<1x24x32xf32> to vector<24x32xf32>
    %57 = vector.shape_cast %54 : vector<24x32xf32> to vector<1x24x32xf32>
    tpu.vector_store %arg8[%c0_23, %c0_24, %c0_25], %57 {strides = array<i32>} : memref<2x24x32xf32, #tpu.memory_space<vmem>>, vector<1x24x32xf32>,
    %58 = vector.extract_strided_slice %12 {offsets = [1, 0, 0], sizes = [1, 8, 64], strides = [1, 1, 1]} : vector<2x8x128xf32> to vector<1x8x64xf32>
    %59 = vector.shape_cast %58 : vector<1x8x64xf32> to vector<8x64xf32>
    %60 = vector.extract_strided_slice %12 {offsets = [1, 0, 64], sizes = [1, 8, 64], strides = [1, 1, 1]} : vector<2x8x128xf32> to vector<1x8x64xf32>
    %61 = vector.shape_cast %60 : vector<1x8x64xf32> to vector<8x64xf32>
    %62 = tpu.concatenate %59, %59, %59, %59, %59, %59, %59, %59 in 0 : vector<8x64xf32>, vector<8x64xf32>, vector<8x64xf32>, vector<8x64xf32>, vector<8x64xf32>, vector<8x64xf32>, vector<8x64xf32>, vector<8x64xf32> -> vector<64x64xf32>
    %63 = arith.mulf %62, %1 : vector<64x64xf32>
    %64 = tpu.concatenate %61, %61, %61, %61, %61, %61, %61, %61 in 0 : vector<8x64xf32>, vector<8x64xf32>, vector<8x64xf32>, vector<8x64xf32>, vector<8x64xf32>, vector<8x64xf32>, vector<8x64xf32>, vector<8x64xf32> -> vector<64x64xf32>
    %65 = arith.mulf %64, %1 : vector<64x64xf32>
    %cst_26 = arith.constant dense<0.000000e+00> : vector<24x64xf32>
    %66 = tpu.matmul %0, %63, %cst_26 {dimension_numbers = #tpu.dot_dimension_numbers<[1], [1], [0], [0], [0, 0, 1, 0], [], []>} : vector<24x64xf32>, vector<64x64xf32>, vector<24x64xf32> -> vector<24x64xf32>
    %cst_27 = arith.constant dense<0xFF800000> : vector<24xf32>
    %67 = vector.multi_reduction <maximumf>, %66, %cst_27 [1] : vector<24x64xf32> to vector<24xf32>
    %68 = vector.shape_cast %67 : vector<24xf32> to vector<24x1xf32>
    %69 = vector.broadcast %68 : vector<24x1xf32> to vector<24x64xf32>
    %70 = arith.subf %66, %69 : vector<24x64xf32>
    %71 = math.exp %70 : vector<24x64xf32>
    %cst_28 = arith.constant dense<0.000000e+00> : vector<24x64xf32>
    %72 = tpu.matmul %71, %65, %cst_28 {dimension_numbers = #tpu.dot_dimension_numbers<[1], [0], [0], [1], [0, 0, 1, 1], [], []>} : vector<24x64xf32>, vector<64x64xf32>, vector<24x64xf32> -> vector<24x64xf32>
    %cst_29 = arith.constant dense<0.000000e+00> : vector<24x64xf32>
    %73 = tpu.matmul %71, %1, %cst_29 {dimension_numbers = #tpu.dot_dimension_numbers<[1], [0], [0], [1], [0, 0, 1, 1], [], []>} : vector<24x64xf32>, vector<64x64xf32>, vector<24x64xf32> -> vector<24x64xf32>
    %74 = tpu.reciprocal %73 {approx = true} : vector<24x64xf32> -> vector<24x64xf32>
    %75 = arith.mulf %72, %74 : vector<24x64xf32>
    %cst_30 = arith.constant dense<0.000000e+00> : vector<24x32xf32>
    %76 = tpu.matmul %75, %2, %cst_30 {dimension_numbers = #tpu.dot_dimension_numbers<[1], [0], [0], [1], [0, 0, 1, 1], [], []>} : vector<24x64xf32>, vector<64x32xf32>, vector<24x32xf32> -> vector<24x32xf32>
    %77 = vector.broadcast %3 : vector<1x32xf32> to vector<24x32xf32>
    %78 = arith.addf %76, %77 : vector<24x32xf32>
    %79 = vector.extract_strided_slice %78 {offsets = [0, 0], sizes = [12, 32], strides = [1, 1]} : vector<24x32xf32> to vector<12x32xf32>
    %80 = vector.extract_strided_slice %78 {offsets = [12, 0], sizes = [12, 32], strides = [1, 1]} : vector<24x32xf32> to vector<12x32xf32>
    %81 = arith.addf %79, %80 : vector<12x32xf32>
    %82 = arith.mulf %81, %81 : vector<12x32xf32>
    %cst_31 = arith.constant dense<0.000000e+00> : vector<12xf32>
    %83 = vector.multi_reduction <add>, %82, %cst_31 [1] : vector<12x32xf32> to vector<12xf32>
    %84 = vector.shape_cast %83 : vector<12xf32> to vector<12x1xf32>
    %85 = math.sqrt %84 : vector<12x1xf32>
    %cst_32 = arith.constant 9.99999993E-9 : f32
    %86 = vector.broadcast %cst_32 : f32 to vector<12x1xf32>
    %87 = arith.addf %85, %86 : vector<12x1xf32>
    %88 = tpu.reciprocal %87 {approx = true} : vector<12x1xf32> -> vector<12x1xf32>
    %89 = vector.broadcast %88 : vector<12x1xf32> to vector<12x32xf32>
    %90 = arith.mulf %81, %89 : vector<12x32xf32>
    %91 = tpu.concatenate %90, %90 in 0 : vector<12x32xf32>, vector<12x32xf32> -> vector<24x32xf32>
    %cst_33 = arith.constant 2.000000e+00 : f32
    %92 = vector.broadcast %cst_33 : f32 to vector<24x32xf32>
    %93 = arith.mulf %92, %91 : vector<24x32xf32>
    %94 = arith.mulf %91, %78 : vector<24x32xf32>
    %cst_34 = arith.constant dense<0.000000e+00> : vector<24xf32>
    %95 = vector.multi_reduction <add>, %94, %cst_34 [1] : vector<24x32xf32> to vector<24xf32>
    %96 = vector.shape_cast %95 : vector<24xf32> to vector<24x1xf32>
    %97 = vector.broadcast %96 : vector<24x1xf32> to vector<24x32xf32>
    %98 = arith.mulf %93, %97 : vector<24x32xf32>
    %99 = arith.subf %78, %98 : vector<24x32xf32>
    %c1 = arith.constant 1 : index
    %c0_35 = arith.constant 0 : index
    %c0_36 = arith.constant 0 : index
    %100 = vector.load %arg8[%c1, %c0_35, %c0_36] : memref<2x24x32xf32, #tpu.memory_space<vmem>>, vector<1x24x32xf32>
    %101 = vector.shape_cast %100 : vector<1x24x32xf32> to vector<24x32xf32>
    %102 = vector.shape_cast %99 : vector<24x32xf32> to vector<1x24x32xf32>
    tpu.vector_store %arg8[%c1, %c0_35, %c0_36], %102 {strides = array<i32>} : memref<2x24x32xf32, #tpu.memory_space<vmem>>, vector<1x24x32xf32>,
    return
  }
  func.func @transform_0(%arg0: i32) -> (i32, i32, i32) {
    %c0_i32 = arith.constant 0 : i32
    %c0_i32_0 = arith.constant 0 : i32
    %c0_i32_1 = arith.constant 0 : i32
    return %arg0, %c0_i32, %c0_i32_0 : i32, i32, i32
  }
  func.func @transform_1(%arg0: i32) -> (i32, i32) {
    %c0_i32 = arith.constant 0 : i32
    %c0_i32_0 = arith.constant 0 : i32
    %c0_i32_1 = arith.constant 0 : i32
    return %c0_i32, %c0_i32_0 : i32, i32
  }
  func.func @transform_2(%arg0: i32) -> (i32, i32) {
    %c0_i32 = arith.constant 0 : i32
    %c0_i32_0 = arith.constant 0 : i32
    %c0_i32_1 = arith.constant 0 : i32
    return %c0_i32, %c0_i32_0 : i32, i32
  }
  func.func @transform_3(%arg0: i32) -> (i32, i32) {
    %c0_i32 = arith.constant 0 : i32
    %c0_i32_0 = arith.constant 0 : i32
    %c0_i32_1 = arith.constant 0 : i32
    return %c0_i32, %c0_i32_0 : i32, i32
  }
  func.func @transform_4(%arg0: i32) -> (i32, i32) {
    %c0_i32 = arith.constant 0 : i32
    %c0_i32_0 = arith.constant 0 : i32
    %c0_i32_1 = arith.constant 0 : i32
    return %c0_i32, %c0_i32_0 : i32, i32
  }
  func.func @transform_5(%arg0: i32) -> (i32, i32) {
    %c0_i32 = arith.constant 0 : i32
    %c0_i32_0 = arith.constant 0 : i32
    %c0_i32_1 = arith.constant 0 : i32
    return %c0_i32, %c0_i32_0 : i32, i32
  }
  func.func @transform_6(%arg0: i32) -> (i32, i32) {
    %c0_i32 = arith.constant 0 : i32
    %c0_i32_0 = arith.constant 0 : i32
    %c0_i32_1 = arith.constant 0 : i32
    return %c0_i32, %c0_i32_0 : i32, i32
  }
  func.func @transform_7(%arg0: i32) -> (i32, i32, i32) {
    %c0_i32 = arith.constant 0 : i32
    %c0_i32_0 = arith.constant 0 : i32
    %c0_i32_1 = arith.constant 0 : i32
    return %arg0, %c0_i32, %c0_i32_0 : i32, i32, i32
  }
}

</mosaic_0001>

<bundles_post_ra>
// kernel: tpu_custom_call.1
= control target key start
LH: loop header
LB: loop body
LE: loop exit
PB: predicated region body
PF: predicated region fallthrough
CT: control target
= control target key end

     0   :  { %12 = vsyncpa [#allocation3], 0  ;;  %s2294_s0 = inlined_call_operand.hbm [shape: f32[2,8,64], index: 0, kind: input, shape index: {}]   ;;  %s2295_s1 = inlined_call_operand.vmem [shape: f32[24,64], index: 1, kind: input, shape index: {}]   ;;  %s2296_s2 = inlined_call_operand.vmem [shape: f32[64,128], index: 2, kind: input, shape index: {}]   ;;  %s2297_s3 = inlined_call_operand.vmem [shape: f32[8,128], index: 3, kind: input, shape index: {}]   ;;  %s2298_s4 = inlined_call_operand.hbm [shape: f32[64,64], index: 4, kind: input, shape index: {}]   ;;  %s2299_s5 = inlined_call_operand.vmem [shape: f32[64,32], index: 5, kind: input, shape index: {}]   ;;  %s2300_s6 = inlined_call_operand.vmem [shape: f32[1,32], index: 6, kind: input, shape index: {}]   ;;  %s2301_s7 = inlined_call_operand.hbm [shape: f32[2,24,32], index: 7, kind: output, shape index: {}]  }
   0x1   :  { %13 = vsyncpa [#allocation6], 0 }
   0x2   :  { %14 = vsyncpa [#allocation4], 0  ;;  %s1735_s24 = smov [#allocation2]  }
   0x3   :  { %s20_s25 = sshll.u32 %s1735_s24, 4  ;;  %s21_s25 = int_to_ptr.vmem [resolvable:$true] %s20_s25 }
   0x4   :  { %s1677_s26 = scalar_lea.vmem %s21_s25, 256  ;;  %p1682_p1 = scmp.lt.s32.totalorder %s21_s25, %s21_s25 }
   0x5   :  { %p1678_p0 = scmp.ne.s32.totalorder %s21_s25, %s1677_s26  ;;  %p1683_p2 = scmp.lt.s32.totalorder %s1677_s26, %s1677_s26 }
   0x7   :  { %p1684_p3 = por %p1683_p2, %p1682_p1 }
   0x9   :  { %p1685_p4 = pnand %p1684_p3, %p1678_p0 }
   0xb   :  { %1688 = shalt.err (!%p1685_p4)
}
   0xc   :  { %s1736_s27 = smov 128   ;;  %s1737_s28 = smov 8  }
   0xd   :  { %26 = dma.hbm_to_vmem [thread:$0]  %s2294_s0, 256, %s21_s25, [#allocation3], %s1736_s27, %s1736_s27, %s1737_s28  }
   0xe   :  { %s1738_s8 = smov [#allocation5]  }
   0xf   :  { %s38_s9 = sshll.u32 %s1738_s8, 4  ;;  %s39_s9 = int_to_ptr.vmem [resolvable:$true] %s38_s9 }
  0x10   :  { %s1697_s10 = scalar_lea.vmem %s39_s9, 1024  ;;  %p1702_p6 = scmp.lt.s32.totalorder %s39_s9, %s39_s9 }
  0x11   :  { %p1698_p5 = scmp.ne.s32.totalorder %s39_s9, %s1697_s10  ;;  %p1703_p7 = scmp.lt.s32.totalorder %s1697_s10, %s1697_s10 }
  0x13   :  { %p1704_p8 = por %p1703_p7, %p1702_p6 }
  0x15   :  { %p1705_p9 = pnand %p1704_p8, %p1698_p5 }
  0x17   :  { %1708 = shalt.err (!%p1705_p9)
}
  0x18   :  { %44 = dma.hbm_to_vmem [thread:$0]  %s2298_s4, 1024, %s39_s9, [#allocation6], %s1736_s27, %s1736_s27, %s1737_s28  }
  0x19   :  { %1729 = dma.done.wait [#allocation3], 256  }
  0x1a   :  { %1730 = vsyncadd [#allocation3], 4294967040 }
  0x1b   :  { %1731 = dma.done.wait [#allocation6], 1024  }
  0x1c   :  { %1732 = vsyncadd [#allocation6], 4294966272  ;;  %v84_v0 = vld [vmem:[%s2296_s2 + $0x38] sm:$0xff]  ;;  %v83_v1 = vld [vmem:[%s2296_s2 + $0x30] sm:$0xff]  ;;  %vm85_vm0 = vcmask 523264   ;;  %s1739_s19 = smov 64  }
  0x1d   :  { %1386 = vmatprep.subr.mxu0 %v84_v0  ;;  %v82_v2 = vld [vmem:[%s2296_s2 + $0x28] sm:$0xff]  ;;  %v75_v3 = vld [vmem:[#allocation2] sm:$0xff]  ;;  %v1807_v5 = vld [vmem:[#allocation5 + $0x28] sm:$0xff]  ;;  %v1740_v18 = vmov 0.0   ;;  %vm1741_vm1 = vmmov 0   ;;  %vm653_vm2 = vcmask 1043456  }
  0x1e   :  { %1387 = vmatpush3.msra.mxu0 %v84_v0  ;;  %1402 = vmatprep.mubr.msk.f32.mxu0 %vm85_vm0, %v75_v3  ;;  %v1805_v4 = vld [vmem:[#allocation5 + $0x38] sm:$0xff]  ;;  %v81_v6 = vld [vmem:[%s2296_s2 + $0x20] sm:$0xff]  ;;  %v80_v8 = vld [vmem:[%s2296_s2 + $0x18] sm:$0xff]  ;;  %vm667_vm3 = vcmask 257024   ;;  %vm663_vm4 = vcmask 261120  }
  0x1f   :  { %1388 = vmatprep.subr.mxu0 %v83_v1  ;;  %200 = vrot.lane.b32.xlu0 %v1805_v4, %s1739_s19  ;;  %v1816_v7 = vld [vmem:[#allocation5 + $0x30] sm:$0xff]  ;;  %v1821_v9 = vld [vmem:[#allocation5 + $0x20] sm:$0xff]  ;;  %v1830_v11 = vld [vmem:[#allocation5 + $0x18] sm:$0xff] }
  0x20   :  { %1389 = vmatpush3.msra.mxu0 %v83_v1  ;;  %196 = vrot.lane.b32.xlu1 %v1807_v5, %s1739_s19  ;;  %v79_v10 = vld [vmem:[%s2296_s2 + $0x10] sm:$0xff]  ;;  %v78_v12 = vld [vmem:[%s2296_s2 + $0x8] sm:$0xff]  ;;  %v1835_v13 = vld [vmem:[#allocation5 + $0x10] sm:$0xff] }
  0x21   :  { %1390 = vmatprep.subr.mxu0 %v82_v2  ;;  %v77_v14 = vld [vmem:[%s2296_s2] sm:$0xff]  ;;  %v1844_v15 = vld [vmem:[#allocation5 + $0x8] sm:$0xff]  ;;  %v76_v16 = vld [vmem:[#allocation2 + $0x8] sm:$0xff]  ;;  %1405 = vmatprep.subr.mxu1 %v1740_v18 }
  0x22   :  { %1391 = vmatpush3.msra.mxu0 %v82_v2  ;;  %v1846_v17 = vld [vmem:[#allocation5] sm:$0xff]  ;;  %1421 = vmatprep.mubr.msk.f32.mxu1 %vm1741_vm1, %v1740_v18  ;;  %v167_v19 = vld [vmem:[%s2297_s3] sm:$0xff]  ;;  %v1940_v45 = vld [vmem:[%s2295_s1 + $0x8] sm:$0xff] }
  0x23   :  { %1392 = vmatprep.subr.mxu0 %v81_v6  ;;  %198 = vrot.lane.b32.xlu0 %v1816_v7, %s1739_s19  ;;  %v1930_v44 = vld [vmem:[%s2295_s1] sm:$0xff]  ;;  %v1949_v46 = vld [vmem:[%s2295_s1 + $0x10] sm:$0xff] }
  0x24   :  { %1393 = vmatpush3.msra.mxu0 %v81_v6  ;;  %194 = vrot.lane.b32.xlu1 %v1821_v9, %s1739_s19 }
  0x25   :  { %1394 = vmatprep.subr.mxu0 %v80_v8 }
  0x26   :  { %1395 = vmatpush3.msra.mxu0 %v80_v8 }
  0x27   :  { %1396 = vmatprep.subr.mxu0 %v79_v10  ;;  %192 = vrot.lane.b32.xlu0 %v1830_v11, %s1739_s19 }
  0x28   :  { %1397 = vmatpush3.msra.mxu0 %v79_v10  ;;  %190 = vrot.lane.b32.xlu1 %v1835_v13, %s1739_s19 }
  0x29   :  { %1398 = vmatprep.subr.mxu0 %v78_v12 }
  0x2a   :  { %1399 = vmatpush3.msra.mxu0 %v78_v12 }
  0x2b   :  { %1400 = vmatprep.subr.mxu0 %v77_v14  ;;  %188 = vrot.lane.b32.xlu0 %v1844_v15, %s1739_s19 }
  0x2c   :  { %1401 = vmatpush3.msra.mxu0 %v77_v14  ;;  %186 = vrot.lane.b32.xlu1 %v1846_v17, %s1739_s19 }
  0x2d   :  { %1403 = vmatmul.mubr.msk.f32.vlgmr.msra.gmra.mxu0 %vm85_vm0, %v76_v16  ;;  %1430 = vmatprep.subr.mxu0 %v1740_v18 }
  0x2e   :  { %1446 = vmatprep.mubr.msk.f32.mxu0 %vm1741_vm1, %v1740_v18 }
  0x91   :  { %v1862_v20 = vpop.permute.xlu0 %200 }
  0x92   :  { %v1864_v21 = vpop.permute.xlu1 %196 }
  0x95   :  { %v1870_v26 = vpop.permute.xlu0 %198 }
  0x96   :  { %v1876_v29 = vpop.permute.xlu1 %194 }
  0x99   :  { %v1896_v35 = vpop.permute.xlu0 %192 }
  0x9a   :  { %v1892_v34 = vpop.permute.xlu1 %190 }
  0x9d   :  { %v1955_v47 = vpop.permute.xlu0 %188 }
  0x9e   :  { %v1957_v48 = vpop.permute.xlu1 %186 }
  0xed   :  { %v1404_v22 = vpop.f32.mrf.mxu0 }
  0xee   :  { %v1866_v23 = vadd.f32 %v1404_v22, %v167_v19 }
  0xef   :  { %v158_v24 = vpop.f32.mrf.mxu0 }
  0xf0   :  { %v1868_v25 = vadd.f32 %v167_v19, %v158_v24  ;;  %v738_v1 = vmul.f32 %v1862_v20, %v1866_v23  ;;  %v736_v2 = vmul.f32 %v1864_v21, %v1866_v23  ;;  %v735_v6 = vmul.f32 %v1876_v29, %v1866_v23 }
  0xf1   :  { %v737_v8 = vmul.f32 %v1870_v26, %v1866_v23  ;;  %v733_v10 = vmul.f32 %v1892_v34, %v1866_v23  ;;  %v734_v12 = vmul.f32 %v1896_v35, %v1866_v23 }
  0xf2   :  { %v177_v27 = vmul.f32 %v1868_v25, %v1805_v4  ;;  %v217_v28 = vmul.f32 %v1862_v20, %v1868_v25  ;;  %v216_v30 = vmul.f32 %v1870_v26, %v1868_v25  ;;  %v176_v31 = vmul.f32 %v1868_v25, %v1816_v7 }
  0xf3   :  { %v214_v32 = vmul.f32 %v1876_v29, %v1868_v25  ;;  %v215_v33 = vmul.f32 %v1864_v21, %v1868_v25  ;;  %v175_v36 = vmul.f32 %v1868_v25, %v1807_v5  ;;  %v212_v37 = vmul.f32 %v1892_v34, %v1868_v25 }
  0xf4   :  { %1406 = vmatpush3.xpose.msk.msra.mxu1 %vm85_vm0, %v177_v27  ;;  %371 = vrot.lane.b32.xlu0 %v217_v28, %s1739_s19  ;;  %v213_v38 = vmul.f32 %v1896_v35, %v1868_v25  ;;  %v174_v39 = vmul.f32 %v1868_v25, %v1821_v9  ;;  %v173_v40 = vmul.f32 %v1868_v25, %v1830_v11 }
  0xf5   :  { %369 = vrot.lane.b32.xlu1 %v216_v30, %s1739_s19  ;;  %1407 = vmatprep.subr.mxu1 %v1740_v18  ;;  %v172_v41 = vmul.f32 %v1868_v25, %v1835_v13  ;;  %v171_v42 = vmul.f32 %v1868_v25, %v1844_v15  ;;  %v170_v43 = vmul.f32 %v1868_v25, %v1846_v17 }
  0xf6   :  { %v211_v0 = vmul.f32 %v1955_v47, %v1868_v25  ;;  %v210_v3 = vmul.f32 %v1957_v48, %v1868_v25  ;;  %v728_v34 = vmul.f32 %v1866_v23, %v1807_v5  ;;  %v727_v35 = vmul.f32 %v1866_v23, %v1821_v9 }
  0xf8   :  { %1408 = vmatpush3.xpose.msk.msra.mxu1 %vm85_vm0, %v176_v31  ;;  %365 = vrot.lane.b32.xlu0 %v214_v32, %s1739_s19  ;;  %v730_v32 = vmul.f32 %v1866_v23, %v1805_v4 }
  0xf9   :  { %367 = vrot.lane.b32.xlu1 %v215_v33, %s1739_s19  ;;  %1409 = vmatprep.subr.mxu1 %v1740_v18  ;;  %v729_v33 = vmul.f32 %v1866_v23, %v1816_v7 }
  0xfc   :  { %1410 = vmatpush3.xpose.msk.msra.mxu1 %vm85_vm0, %v175_v36  ;;  %361 = vrot.lane.b32.xlu0 %v212_v37, %s1739_s19  ;;  %v726_v36 = vmul.f32 %v1866_v23, %v1830_v11  ;;  %v725_v37 = vmul.f32 %v1866_v23, %v1835_v13 }
  0xfd   :  { %363 = vrot.lane.b32.xlu1 %v213_v38, %s1739_s19  ;;  %1411 = vmatprep.subr.mxu1 %v1740_v18  ;;  %v724_v38 = vmul.f32 %v1866_v23, %v1844_v15 }
 0x100   :  { %1412 = vmatpush3.xpose.msk.msra.mxu1 %vm85_vm0, %v174_v39  ;;  %v723_v39 = vmul.f32 %v1866_v23, %v1846_v17 }
 0x101   :  { %1413 = vmatprep.subr.mxu1 %v1740_v18 }
 0x104   :  { %1414 = vmatpush3.xpose.msk.msra.mxu1 %vm85_vm0, %v173_v40  ;;  %v2075_v40 = vld [vmem:[%s2299_s5 + $0x38] sm:$0xff] }
 0x105   :  { %1415 = vmatprep.subr.mxu1 %v1740_v18 }
 0x108   :  { %1416 = vmatpush3.xpose.msk.msra.mxu1 %vm85_vm0, %v172_v41  ;;  %v2083_v41 = vld [vmem:[%s2299_s5 + $0x30] sm:$0xff] }
 0x109   :  { %1417 = vmatprep.subr.mxu1 %v1740_v18 }
 0x10c   :  { %1418 = vmatpush3.xpose.msk.msra.mxu1 %vm85_vm0, %v171_v42  ;;  %v2092_v42 = vld [vmem:[%s2299_s5 + $0x28] sm:$0xff] }
 0x10d   :  { %1419 = vmatprep.subr.mxu1 %v1740_v18 }
 0x110   :  { %1420 = vmatpush3.xpose.msk.msra.mxu1 %vm85_vm0, %v170_v43  ;;  %v2101_v43 = vld [vmem:[%s2299_s5 + $0x20] sm:$0xff] }
 0x111   :  { %1480 = vmatprep.subr.mxu1 %v1740_v18 }
 0x113   :  { %1422 = vmatmul.mubr.msk.f32.vlgmr.msra.gmra.mxu1 %vm85_vm0, %v1930_v44 }
 0x114   :  { %1424 = vmatprep.mubr.msk.f32.mxu1 %vm1741_vm1, %v1740_v18  ;;  %1481 = vmatpush3.msra.mxu1 %v2075_v40 }
 0x115   :  { %1482 = vmatprep.subr.mxu1 %v1740_v18 }
 0x116   :  { %1483 = vmatpush3.msra.mxu1 %v2083_v41 }
 0x117   :  { %1425 = vmatmul.mubr.msk.f32.gmra.mxu1 %vm85_vm0, %v1940_v45  ;;  %1484 = vmatprep.subr.mxu1 %v1740_v18 }
 0x118   :  { %1427 = vmatprep.mubr.msk.f32.mxu1 %vm1741_vm1, %v1740_v18  ;;  %1485 = vmatpush3.msra.mxu1 %v2092_v42 }
 0x119   :  { %1486 = vmatprep.subr.mxu1 %v1740_v18 }
 0x11a   :  { %1487 = vmatpush3.msra.mxu1 %v2101_v43 }
 0x11b   :  { %1428 = vmatmul.mubr.msk.f32.gmra.mxu1 %vm85_vm0, %v1949_v46  ;;  %1488 = vmatprep.subr.mxu1 %v1740_v18 }
 0x11c   :  { %1496 = vmatprep.mubr.msk.f32.mxu1 %vm1741_vm1, %v1740_v18 }
 0x166   :  { %v372_v49 = vpop.permute.xlu0 %371 }
 0x167   :  { %v370_v50 = vpop.permute.xlu1 %369  ;;  %1431 = vmatpush3.msra.mxu0 %v372_v49  ;;  %v2133_v49 = vld [vmem:[%s2299_s5] sm:$0xff] }
 0x168   :  { %1432 = vmatprep.subr.mxu0 %v1740_v18 }
 0x169   :  { %1433 = vmatpush3.msra.mxu0 %v370_v50 }
 0x16a   :  { %1434 = vmatprep.subr.mxu0 %v1740_v18  ;;  %v366_v51 = vpop.permute.xlu0 %365 }
 0x16b   :  { %v368_v52 = vpop.permute.xlu1 %367 }
 0x16c   :  { %1435 = vmatpush3.msra.mxu0 %v368_v52 }
 0x16d   :  { %1436 = vmatprep.subr.mxu0 %v1740_v18 }
 0x16e   :  { %1437 = vmatpush3.msra.mxu0 %v366_v51  ;;  %v362_v54 = vpop.permute.xlu0 %361 }
 0x16f   :  { %1438 = vmatprep.subr.mxu0 %v1740_v18  ;;  %v364_v53 = vpop.permute.xlu1 %363 }
 0x170   :  { %1439 = vmatpush3.msra.mxu0 %v364_v53 }
 0x171   :  { %1440 = vmatprep.subr.mxu0 %v1740_v18 }
 0x172   :  { %1441 = vmatpush3.msra.mxu0 %v362_v54 }
 0x173   :  { %1442 = vmatprep.subr.mxu0 %v1740_v18 }
 0x1d3   :  { %v317_v55 = vpop.f32.mrf.mxu1 }
 0x1d4   :  { %v331_v56 = vsel %vm85_vm0, %v317_v55, -inf }
 0x1d5   :  { %332 = vmax.xlane.f32.xlu0 %v331_v56  ;;  %v1423_v57 = vpop.f32.mrf.mxu1 }
 0x1d7   :  { %v322_v58 = vpop.f32.mrf.mxu1 }
 0x1d8   :  { %v334_v59 = vsel %vm85_vm0, %v322_v58, -inf }
 0x1d9   :  { %335 = vmax.xlane.f32.xlu1 %v334_v59  ;;  %v1426_v60 = vpop.f32.mrf.mxu1 }
 0x1db   :  { %v327_v61 = vpop.f32.mrf.mxu1 }
 0x1dc   :  { %v337_v62 = vsel %vm85_vm0, %v327_v61, -inf }
 0x1dd   :  { %338 = vmax.xlane.f32.xlu0 %v337_v62  ;;  %v1429_v63 = vpop.f32.mrf.mxu1 }
 0x1ea   :  { %359 = vrot.lane.b32.xlu1 %v211_v0, %s1739_s19 }
 0x1ee   :  { %883 = vrot.lane.b32.xlu1 %v738_v1, %s1739_s19 }
 0x1f2   :  { %879 = vrot.lane.b32.xlu1 %v736_v2, %s1739_s19 }
 0x1f3   :  { %357 = vrot.lane.b32.xlu0 %v210_v3, %s1739_s19 }
 0x1f6   :  { %877 = vrot.lane.b32.xlu1 %v735_v6, %s1739_s19 }
 0x1f7   :  { %881 = vrot.lane.b32.xlu0 %v737_v8, %s1739_s19 }
 0x1fa   :  { %873 = vrot.lane.b32.xlu1 %v733_v10, %s1739_s19 }
 0x1fb   :  { %875 = vrot.lane.b32.xlu0 %v734_v12, %s1739_s19 }
 0x25e   :  { %v333_v14 = vpop.xlane.xlu0 %332 }
 0x25f   :  { %v340_v16 = vsub.f32 %v317_v55, %v333_v14 }
 0x261   :  { %v343_v19 = vmul.f32 1.442695, %v340_v16 }
 0x262   :  { %v336_v20 = vpop.xlane.xlu1 %335 }
 0x263   :  { %1629 = vpow2.f32 %v343_v19  ;;  %v341_v21 = vsub.f32 %v322_v58, %v336_v20 }
 0x265   :  { %v345_v22 = vmul.f32 1.442695, %v341_v21 }
 0x266   :  { %v360_v24 = vpop.permute.xlu1 %359  ;;  %v339_v25 = vpop.xlane.xlu0 %338 }
 0x267   :  { %1631 = vpow2.f32 %v345_v22  ;;  %v342_v26 = vsub.f32 %v327_v61, %v339_v25  ;;  %1443 = vmatpush3.msra.mxu0 %v360_v24 }
 0x268   :  { %1444 = vmatprep.subr.mxu0 %v1740_v18 }
 0x269   :  { %v347_v27 = vmul.f32 1.442695, %v342_v26 }
 0x26a   :  { %v358_v28 = vpop.permute.xlu0 %357  ;;  %v884_v61 = vpop.permute.xlu1 %883 }
 0x26b   :  { %1633 = vpow2.f32 %v347_v27  ;;  %1445 = vmatpush3.msra.mxu0 %v358_v28 }
 0x26c   :  { %1455 = vmatprep.subr.mxu0 %v1740_v18 }
 0x26e   :  { %v880_v0 = vpop.permute.xlu1 %879  ;;  %v882_v3 = vpop.permute.xlu0 %881 }
 0x270   :  { %v1630_v29 = vpop.eup %1629 }
 0x271   :  { %1447 = vmatmul.mubr.msk.f32.vlgmr.msra.gmra.mxu0 %vm85_vm0, %v1630_v29 }
 0x272   :  { %1456 = vmatpush3.msra.mxu0 %v1805_v4  ;;  %1449 = vmatprep.mubr.msk.f32.mxu0 %vm1741_vm1, %v1740_v18  ;;  %v878_v8 = vpop.permute.xlu1 %877  ;;  %v876_v14 = vpop.permute.xlu0 %875 }
 0x273   :  { %1457 = vmatprep.subr.mxu0 %v1740_v18 }
 0x274   :  { %v1632_v30 = vpop.eup %1631  ;;  %1458 = vmatpush3.msra.mxu0 %v1816_v7 }
 0x275   :  { %1459 = vmatprep.subr.mxu0 %v1740_v18  ;;  %1450 = vmatmul.mubr.msk.f32.gmra.mxu0 %vm85_vm0, %v1632_v30 }
 0x276   :  { %1460 = vmatpush3.msra.mxu0 %v1807_v5  ;;  %1452 = vmatprep.mubr.msk.f32.mxu0 %vm1741_vm1, %v1740_v18  ;;  %v874_v16 = vpop.permute.xlu1 %873 }
 0x277   :  { %1461 = vmatprep.subr.mxu0 %v1740_v18 }
 0x278   :  { %v1634_v31 = vpop.eup %1633  ;;  %1462 = vmatpush3.msra.mxu0 %v1821_v9 }
 0x279   :  { %1463 = vmatprep.subr.mxu0 %v1740_v18  ;;  %1453 = vmatmul.mubr.msk.f32.gmra.mxu0 %vm85_vm0, %v1634_v31 }
 0x27a   :  { %1464 = vmatpush3.msra.mxu0 %v1830_v11  ;;  %1471 = vmatprep.mubr.msk.f32.mxu0 %vm1741_vm1, %v1740_v18 }
 0x27b   :  { %1465 = vmatprep.subr.mxu0 %v1740_v18 }
 0x27c   :  { %1466 = vmatpush3.msra.mxu0 %v1835_v13 }
 0x27d   :  { %1467 = vmatprep.subr.mxu0 %v1740_v18 }
 0x27e   :  { %1468 = vmatpush3.msra.mxu0 %v1844_v15 }
 0x27f   :  { %1469 = vmatprep.subr.mxu0 %v1740_v18 }
 0x280   :  { %1470 = vmatpush3.msra.mxu0 %v1846_v17 }
 0x281   :  { %1472 = vmatmul.mubr.msk.f32.vlgmr.msra.gmra.mxu0 %vm85_vm0, %v1630_v29  ;;  %1505 = vmatprep.subr.mxu0 %v1740_v18  ;;  %v731_v29 = vmul.f32 %v1957_v48, %v1866_v23 }
 0x282   :  { %1506 = vmatpush3.xpose.msk.msra.mxu0 %vm85_vm0, %v730_v32  ;;  %1474 = vmatprep.mubr.msk.f32.mxu0 %vm1741_vm1, %v1740_v18 }
 0x283   :  { %1507 = vmatprep.subr.mxu0 %v1740_v18 }
 0x285   :  { %1475 = vmatmul.mubr.msk.f32.gmra.mxu0 %vm85_vm0, %v1632_v30  ;;  %v732_v30 = vmul.f32 %v1955_v47, %v1866_v23 }
 0x286   :  { %1508 = vmatpush3.xpose.msk.msra.mxu0 %vm85_vm0, %v729_v33  ;;  %1477 = vmatprep.mubr.msk.f32.mxu0 %vm1741_vm1, %v1740_v18 }
 0x287   :  { %1509 = vmatprep.subr.mxu0 %v1740_v18 }
 0x289   :  { %1478 = vmatmul.mubr.msk.f32.gmra.mxu0 %vm85_vm0, %v1634_v31 }
 0x28a   :  { %1510 = vmatpush3.xpose.msk.msra.mxu0 %vm85_vm0, %v728_v34  ;;  %1521 = vmatprep.mubr.msk.f32.mxu0 %vm1741_vm1, %v1740_v18 }
 0x28b   :  { %1511 = vmatprep.subr.mxu0 %v1740_v18 }
 0x28e   :  { %1512 = vmatpush3.xpose.msk.msra.mxu0 %vm85_vm0, %v727_v35 }
 0x28f   :  { %1513 = vmatprep.subr.mxu0 %v1740_v18 }
 0x292   :  { %1514 = vmatpush3.xpose.msk.msra.mxu0 %vm85_vm0, %v726_v36 }
 0x293   :  { %1515 = vmatprep.subr.mxu0 %v1740_v18 }
 0x296   :  { %1516 = vmatpush3.xpose.msk.msra.mxu0 %vm85_vm0, %v725_v37 }
 0x297   :  { %1517 = vmatprep.subr.mxu0 %v1740_v18 }
 0x29a   :  { %1518 = vmatpush3.xpose.msk.msra.mxu0 %vm85_vm0, %v724_v38 }
 0x29b   :  { %1519 = vmatprep.subr.mxu0 %v1740_v18 }
 0x29e   :  { %1520 = vmatpush3.xpose.msk.msra.mxu0 %vm85_vm0, %v723_v39 }
 0x29f   :  { %1580 = vmatprep.subr.mxu0 %v1740_v18 }
 0x2a1   :  { %1522 = vmatmul.mubr.msk.f32.vlgmr.msra.gmra.mxu0 %vm85_vm0, %v1930_v44  ;;  %v2110_v44 = vld [vmem:[%s2299_s5 + $0x18] sm:$0xff] }
 0x2a2   :  { %1524 = vmatprep.mubr.msk.f32.mxu0 %vm1741_vm1, %v1740_v18  ;;  %1581 = vmatpush3.msra.mxu0 %v2075_v40 }
 0x2a3   :  { %1582 = vmatprep.subr.mxu0 %v1740_v18  ;;  %1489 = vmatpush3.msra.mxu1 %v2110_v44 }
 0x2a4   :  { %1583 = vmatpush3.msra.mxu0 %v2083_v41  ;;  %1490 = vmatprep.subr.mxu1 %v1740_v18 }
 0x2a5   :  { %1525 = vmatmul.mubr.msk.f32.gmra.mxu0 %vm85_vm0, %v1940_v45  ;;  %1584 = vmatprep.subr.mxu0 %v1740_v18  ;;  %v2115_v45 = vld [vmem:[%s2299_s5 + $0x10] sm:$0xff] }
 0x2a6   :  { %1527 = vmatprep.mubr.msk.f32.mxu0 %vm1741_vm1, %v1740_v18  ;;  %1585 = vmatpush3.msra.mxu0 %v2092_v42 }
 0x2a7   :  { %1586 = vmatprep.subr.mxu0 %v1740_v18  ;;  %1491 = vmatpush3.msra.mxu1 %v2115_v45 }
 0x2a8   :  { %1587 = vmatpush3.msra.mxu0 %v2101_v43  ;;  %1492 = vmatprep.subr.mxu1 %v1740_v18 }
 0x2a9   :  { %1528 = vmatmul.mubr.msk.f32.gmra.mxu0 %vm85_vm0, %v1949_v46  ;;  %1588 = vmatprep.subr.mxu0 %v1740_v18  ;;  %v2124_v46 = vld [vmem:[%s2299_s5 + $0x8] sm:$0xff] }
 0x2aa   :  { %1596 = vmatprep.mubr.msk.f32.mxu0 %vm1741_vm1, %v1740_v18  ;;  %1589 = vmatpush3.msra.mxu0 %v2110_v44 }
 0x2ab   :  { %1590 = vmatprep.subr.mxu0 %v1740_v18  ;;  %1493 = vmatpush3.msra.mxu1 %v2124_v46 }
 0x2ac   :  { %1591 = vmatpush3.msra.mxu0 %v2115_v45  ;;  %1494 = vmatprep.subr.mxu1 %v1740_v18 }
 0x2ad   :  { %1592 = vmatprep.subr.mxu0 %v1740_v18  ;;  %1495 = vmatpush3.msra.mxu1 %v2133_v49 }
 0x2ae   :  { %1593 = vmatpush3.msra.mxu0 %v2124_v46  ;;  %1530 = vmatprep.subr.mxu1 %v1740_v18 }
 0x2af   :  { %1594 = vmatprep.subr.mxu0 %v1740_v18 }
 0x2b0   :  { %1595 = vmatpush3.msra.mxu0 %v2133_v49 }
 0x331   :  { %v456_v50 = vpop.f32.mrf.mxu0 }
 0x333   :  { %v1448_v51 = vpop.f32.mrf.mxu0 }
 0x335   :  { %v461_v52 = vpop.f32.mrf.mxu0 }
 0x337   :  { %v1451_v53 = vpop.f32.mrf.mxu0 }
 0x339   :  { %v466_v54 = vpop.f32.mrf.mxu0 }
 0x33b   :  { %v1454_v55 = vpop.f32.mrf.mxu0 }
 0x341   :  { %v536_v56 = vpop.f32.mrf.mxu0 }
 0x342   :  { %1635 = vrcp.f32 %v536_v56 }
 0x343   :  { %v1473_v57 = vpop.f32.mrf.mxu0 }
 0x345   :  { %v541_v58 = vpop.f32.mrf.mxu0 }
 0x346   :  { %1637 = vrcp.f32 %v541_v58 }
 0x347   :  { %v1476_v59 = vpop.f32.mrf.mxu0 }
 0x349   :  { %v546_v60 = vpop.f32.mrf.mxu0 }
 0x34a   :  { %1639 = vrcp.f32 %v546_v60 }
 0x34b   :  { %v1479_v62 = vpop.f32.mrf.mxu0 }
 0x34f   :  { %v1636_v63 = vpop.eup %1635 }
 0x350   :  { %v553_v1 = vmul.f32 %v1636_v63, %v456_v50 }
 0x352   :  { %1497 = vmatmul.mubr.msk.f32.vlgmr.msra.gmra.mxu1 %vm85_vm0, %v553_v1 }
 0x353   :  { %v1638_v2 = vpop.eup %1637  ;;  %1531 = vmatpush3.msra.mxu1 %v884_v61  ;;  %1499 = vmatprep.mubr.msk.f32.mxu1 %vm1741_vm1, %v1740_v18 }
 0x354   :  { %1532 = vmatprep.subr.mxu1 %v1740_v18  ;;  %v554_v6 = vmul.f32 %v1638_v2, %v461_v52 }
 0x355   :  { %1533 = vmatpush3.msra.mxu1 %v882_v3 }
 0x356   :  { %1534 = vmatprep.subr.mxu1 %v1740_v18  ;;  %1500 = vmatmul.mubr.msk.f32.gmra.mxu1 %vm85_vm0, %v554_v6 }
 0x357   :  { %v1640_v10 = vpop.eup %1639  ;;  %1535 = vmatpush3.msra.mxu1 %v880_v0  ;;  %1502 = vmatprep.mubr.msk.f32.mxu1 %vm1741_vm1, %v1740_v18 }
 0x358   :  { %1536 = vmatprep.subr.mxu1 %v1740_v18  ;;  %v555_v12 = vmul.f32 %v1640_v10, %v466_v54 }
 0x359   :  { %1537 = vmatpush3.msra.mxu1 %v878_v8 }
 0x35a   :  { %1538 = vmatprep.subr.mxu1 %v1740_v18  ;;  %1503 = vmatmul.mubr.msk.f32.gmra.mxu1 %vm85_vm0, %v555_v12 }
 0x35b   :  { %1539 = vmatpush3.msra.mxu1 %v876_v14  ;;  %1546 = vmatprep.mubr.msk.f32.mxu1 %vm1741_vm1, %v1740_v18 }
 0x35c   :  { %1540 = vmatprep.subr.mxu1 %v1740_v18 }
 0x35d   :  { %1541 = vmatpush3.msra.mxu1 %v874_v16 }
 0x35e   :  { %1542 = vmatprep.subr.mxu1 %v1740_v18 }
 0x361   :  { %v829_v19 = vpop.f32.mrf.mxu0 }
 0x362   :  { %v843_v20 = vsel %vm85_vm0, %v829_v19, -inf }
 0x363   :  { %844 = vmax.xlane.f32.xlu1 %v843_v20  ;;  %v1523_v21 = vpop.f32.mrf.mxu0 }
 0x365   :  { %v834_v22 = vpop.f32.mrf.mxu0 }
 0x366   :  { %v846_v24 = vsel %vm85_vm0, %v834_v22, -inf }
 0x367   :  { %847 = vmax.xlane.f32.xlu0 %v846_v24  ;;  %v1526_v25 = vpop.f32.mrf.mxu0 }
 0x369   :  { %v839_v26 = vpop.f32.mrf.mxu0 }
 0x36a   :  { %v849_v27 = vsel %vm85_vm0, %v839_v26, -inf }
 0x36b   :  { %850 = vmax.xlane.f32.xlu0 %v849_v27  ;;  %v1529_v28 = vpop.f32.mrf.mxu0 }
 0x374   :  { %869 = vrot.lane.b32.xlu1 %v731_v29, %s1739_s19 }
 0x381   :  { %871 = vrot.lane.b32.xlu0 %v732_v30, %s1739_s19 }
 0x3ec   :  { %v845_v31 = vpop.xlane.xlu1 %844 }
 0x3ed   :  { %v852_v32 = vsub.f32 %v829_v19, %v845_v31 }
 0x3ef   :  { %v855_v33 = vmul.f32 1.442695, %v852_v32 }
 0x3f0   :  { %v848_v34 = vpop.xlane.xlu0 %847  ;;  %v870_v48 = vpop.permute.xlu1 %869 }
 0x3f1   :  { %1641 = vpow2.f32 %v855_v33  ;;  %v853_v35 = vsub.f32 %v834_v22, %v848_v34 }
 0x3f3   :  { %v857_v36 = vmul.f32 1.442695, %v853_v35 }
 0x3f4   :  { %v851_v37 = vpop.xlane.xlu0 %850 }
 0x3f5   :  { %1643 = vpow2.f32 %v857_v36  ;;  %v854_v38 = vsub.f32 %v839_v26, %v851_v37 }
 0x3f7   :  { %v859_v39 = vmul.f32 1.442695, %v854_v38 }
 0x3f8   :  { %v872_v50 = vpop.permute.xlu0 %871 }
 0x3f9   :  { %1645 = vpow2.f32 %v859_v39  ;;  %1543 = vmatpush3.msra.mxu1 %v872_v50 }
 0x3fa   :  { %1544 = vmatprep.subr.mxu1 %v1740_v18 }
 0x3fb   :  { %1545 = vmatpush3.msra.mxu1 %v870_v48 }
 0x3fc   :  { %1555 = vmatprep.subr.mxu1 %v1740_v18 }
 0x3fe   :  { %v1642_v23 = vpop.eup %1641 }
 0x3ff   :  { %1547 = vmatmul.mubr.msk.f32.vlgmr.msra.gmra.mxu1 %vm85_vm0, %v1642_v23 }
 0x400   :  { %1556 = vmatpush3.msra.mxu1 %v1805_v4  ;;  %1549 = vmatprep.mubr.msk.f32.mxu1 %vm1741_vm1, %v1740_v18 }
 0x401   :  { %1557 = vmatprep.subr.mxu1 %v1740_v18 }
 0x402   :  { %v1644_v47 = vpop.eup %1643  ;;  %1558 = vmatpush3.msra.mxu1 %v1816_v7 }
 0x403   :  { %1559 = vmatprep.subr.mxu1 %v1740_v18  ;;  %1550 = vmatmul.mubr.msk.f32.gmra.mxu1 %vm85_vm0, %v1644_v47 }
 0x404   :  { %1560 = vmatpush3.msra.mxu1 %v1807_v5  ;;  %1552 = vmatprep.mubr.msk.f32.mxu1 %vm1741_vm1, %v1740_v18 }
 0x405   :  { %1561 = vmatprep.subr.mxu1 %v1740_v18 }
 0x406   :  { %v1646_v4 = vpop.eup %1645  ;;  %1562 = vmatpush3.msra.mxu1 %v1821_v9 }
 0x407   :  { %1563 = vmatprep.subr.mxu1 %v1740_v18  ;;  %1553 = vmatmul.mubr.msk.f32.gmra.mxu1 %vm85_vm0, %v1646_v4 }
 0x408   :  { %1564 = vmatpush3.msra.mxu1 %v1830_v11  ;;  %1571 = vmatprep.mubr.msk.f32.mxu1 %vm1741_vm1, %v1740_v18  ;;  %v2212_v11 = vld [vmem:[%s2300_s6] ss:$0 sm:$0xff]  ;;  %s1742_s6 = smov [#allocation7]  }
 0x409   :  { %1565 = vmatprep.subr.mxu1 %v1740_v18  ;;  %s1232_s29 = sshll.u32 %s1742_s6, 4  ;;  %s1233_s29 = int_to_ptr.vmem [resolvable:$true] %s1232_s29 }
 0x40a   :  { %1566 = vmatpush3.msra.mxu1 %v1835_v13  ;;  %s1709_s2 = scalar_lea.vmem %s1233_s29, 768  ;;  %p1714_p11 = scmp.lt.s32.totalorder %s1233_s29, %s1233_s29 }
 0x40b   :  { %1567 = vmatprep.subr.mxu1 %v1740_v18  ;;  %p1710_p10 = scmp.ne.s32.totalorder %s1233_s29, %s1709_s2  ;;  %p1715_p12 = scmp.lt.s32.totalorder %s1709_s2, %s1709_s2 }
 0x40c   :  { %1568 = vmatpush3.msra.mxu1 %v1844_v15 }
 0x40d   :  { %1569 = vmatprep.subr.mxu1 %v1740_v18  ;;  %p1716_p13 = por %p1715_p12, %p1714_p11 }
 0x40e   :  { %1570 = vmatpush3.msra.mxu1 %v1846_v17 }
 0x40f   :  { %1572 = vmatmul.mubr.msk.f32.vlgmr.msra.gmra.mxu1 %vm85_vm0, %v1642_v23  ;;  %1605 = vmatprep.subr.mxu1 %v1740_v18  ;;  %p1717_p0 = pnand %p1716_p13, %p1710_p10 }
 0x410   :  { %1574 = vmatprep.mubr.msk.f32.mxu1 %vm1741_vm1, %v1740_v18  ;;  %1613 = vmatpush3.msra.mxu1 %v2075_v40 }
 0x411   :  { %1606 = vmatprep.subr.mxu1 %v1740_v18 }
 0x412   :  { %v637_v5 = vpop.f32.mrf.mxu1  ;;  %1614 = vmatpush3.msra.mxu1 %v2083_v41 }
 0x413   :  { %1575 = vmatmul.mubr.msk.f32.gmra.mxu1 %vm85_vm0, %v1644_v47  ;;  %1607 = vmatprep.subr.mxu1 %v1740_v18 }
 0x414   :  { %v1498_v7 = vpop.f32.mrf.mxu1  ;;  %1577 = vmatprep.mubr.msk.f32.mxu1 %vm1741_vm1, %v1740_v18  ;;  %1615 = vmatpush3.msra.mxu1 %v2092_v42 }
 0x415   :  { %1608 = vmatprep.subr.mxu1 %v1740_v18 }
 0x416   :  { %v642_v9 = vpop.f32.mrf.mxu1  ;;  %1616 = vmatpush3.msra.mxu1 %v2101_v43 }
 0x417   :  { %1578 = vmatmul.mubr.msk.f32.gmra.mxu1 %vm85_vm0, %v1646_v4  ;;  %1609 = vmatprep.subr.mxu1 %v1740_v18  ;;  %v2218_v15 = vadd.f32 %v2212_v11, %v642_v9 }
 0x418   :  { %v1501_v13 = vpop.f32.mrf.mxu1  ;;  %1617 = vmatpush3.msra.mxu1 %v2110_v44  ;;  %1599 = vmatprep.mubr.msk.f32.mxu1 %vm1741_vm1, %v1740_v18  ;;  %v2231_v44 = vadd.f32 %v2212_v11, %v637_v5 }
 0x419   :  { %1610 = vmatprep.subr.mxu1 %v1740_v18  ;;  %v654_v42 = vrot.slane %v2218_v15, 4 }
 0x41a   :  { %v647_v17 = vpop.f32.mrf.mxu1  ;;  %1618 = vmatpush3.msra.mxu1 %v2115_v45 }
 0x41b   :  { %v2223_v40 = vadd.f32 %v2212_v11, %v647_v17  ;;  %1611 = vmatprep.subr.mxu1 %v1740_v18 }
 0x41c   :  { %v1504_v41 = vpop.f32.mrf.mxu1  ;;  %1619 = vmatpush3.msra.mxu1 %v2124_v46 }
 0x41d   :  { %v655_v43 = vrot.slane %v2223_v40, 4  ;;  %1612 = vmatprep.subr.mxu1 %v1740_v18 }
 0x41e   :  { %1620 = vmatpush3.msra.mxu1 %v2133_v49 }
 0x41f   :  { %v660_v45 = vadd.f32 %v655_v43, %v2218_v15  ;;  %v656_v51 = vsel %vm653_vm2, %v654_v42, %v655_v43 }
 0x420   :  { %v659_v52 = vadd.f32 %v656_v51, %v2231_v44 }
 0x421   :  { %v662_v53 = vmul.f32 %v660_v45, %v660_v45 }
 0x422   :  { %v661_v46 = vmul.f32 %v659_v52, %v659_v52 }
 0x423   :  { %v668_v54 = vsel %vm667_vm3, %v662_v53, 0.0 }
 0x424   :  { %669 = vadd.xlane.f32.xlu1 %v668_v54  ;;  %v664_v55 = vsel %vm663_vm4, %v661_v46, 0.0 }
 0x425   :  { %665 = vadd.xlane.f32.xlu0 %v664_v55 }
 0x4ad   :  { %v670_v56 = vpop.xlane.xlu1 %669 }
 0x4ae   :  { %1647 = vrsqrt.f32 %v670_v56  ;;  %v666_v57 = vpop.xlane.xlu0 %665  ;;  %vm680_vm5 = vcmp.eq.f32.partialorder %v670_v56, inf  ;;  %v683_v60 = vand.u32 2147483648, %v670_v56  ;;  %vm682_vm6 = vcmp.eq.f32.partialorder %v670_v56, 0.0 }
 0x4af   :  { %1649 = vrsqrt.f32 %v666_v57  ;;  %vm673_vm7 = vcmp.eq.f32.partialorder %v666_v57, inf  ;;  %v676_v63 = vand.u32 2147483648, %v666_v57  ;;  %vm675_vm8 = vcmp.eq.f32.partialorder %v666_v57, 0.0 }
 0x4bb   :  { %v1648_v49 = vpop.eup %1647 }
 0x4bc   :  { %v1650_v58 = vpop.eup %1649  ;;  %v679_v59 = vmul.f32 %v1648_v49, %v670_v56 }
 0x4bd   :  { %v672_v61 = vmul.f32 %v1650_v58, %v666_v57 }
 0x4be   :  { %v681_v62 = vsel %vm680_vm5, %v670_v56, %v679_v59 }
 0x4bf   :  { %v684_v0 = vsel %vm682_vm6, %v683_v60, %v681_v62  ;;  %v674_v1 = vsel %vm673_vm7, %v666_v57, %v672_v61  ;;  %v968_v2 = vpop.f32.mrf.mxu1 }
 0x4c0   :  { %v686_v3 = vadd.f32 1e-08, %v684_v0  ;;  %v677_v6 = vsel %vm675_vm8, %v676_v63, %v674_v1 }
 0x4c1   :  { %v685_v8 = vadd.f32 1e-08, %v677_v6  ;;  %v1548_v10 = vpop.f32.mrf.mxu1 }
 0x4c2   :  { %1651 = vrcp.f32 %v686_v3 }
 0x4c3   :  { %1653 = vrcp.f32 %v685_v8  ;;  %v973_v12 = vpop.f32.mrf.mxu1 }
 0x4c5   :  { %v1551_v14 = vpop.f32.mrf.mxu1 }
 0x4c7   :  { %v978_v16 = vpop.f32.mrf.mxu1 }
 0x4c9   :  { %v1554_v19 = vpop.f32.mrf.mxu1 }
 0x4cf   :  { %v1652_v20 = vpop.eup %1651  ;;  %v1048_v21 = vpop.f32.mrf.mxu1 }
 0x4d0   :  { %v1654_v22 = vpop.eup %1653  ;;  %1655 = vrcp.f32 %v1048_v21  ;;  %v690_v24 = vmul.f32 %v1652_v20, %v660_v45 }
 0x4d1   :  { %v1573_v25 = vpop.f32.mrf.mxu1  ;;  %v689_v26 = vmul.f32 %v1654_v22, %v659_v52 }
 0x4d2   :  { %v694_v27 = vrot.slane %v690_v24, 4 }
 0x4d3   :  { %v1053_v28 = vpop.f32.mrf.mxu1  ;;  %v702_v29 = vmul.f32 %v689_v26, %v2231_v44  ;;  %v693_v30 = vrot.slane %v689_v26, 4  ;;  %v699_v5 = vmul.f32 2.0, %v689_v26 }
 0x4d4   :  { %1657 = vrcp.f32 %v1053_v28 }
 0x4d5   :  { %v1576_v31 = vpop.f32.mrf.mxu1  ;;  %v705_v32 = vsel %vm663_vm4, %v702_v29, 0.0  ;;  %v695_v33 = vsel %vm653_vm2, %v693_v30, %v694_v27  ;;  %v698_v34 = vsel %vm653_vm2, %v690_v24, %v693_v30 }
 0x4d6   :  { %706 = vadd.xlane.f32.xlu1 %v705_v32  ;;  %v704_v35 = vmul.f32 %v695_v33, %v2223_v40  ;;  %v701_v17 = vmul.f32 2.0, %v695_v33  ;;  %v703_v63 = vmul.f32 %v698_v34, %v2218_v15 }
 0x4d7   :  { %v1058_v36 = vpop.f32.mrf.mxu1 }
 0x4d8   :  { %1659 = vrcp.f32 %v1058_v36  ;;  %v711_v37 = vsel %vm663_vm4, %v704_v35, 0.0  ;;  %v708_v0 = vsel %vm663_vm4, %v703_v63, 0.0 }
 0x4d9   :  { %v1579_v38 = vpop.f32.mrf.mxu1 }
 0x4da   :  { %712 = vadd.xlane.f32.xlu1 %v711_v37 }
 0x4dd   :  { %v1656_v39 = vpop.eup %1655 }
 0x4de   :  { %v1065_v50 = vmul.f32 %v1656_v39, %v968_v2  ;;  %v700_v2 = vmul.f32 2.0, %v698_v34 }
 0x4e0   :  { %1597 = vmatmul.mubr.msk.f32.vlgmr.msra.gmra.mxu0 %vm85_vm0, %v1065_v50 }
 0x4e1   :  { %v1658_v48 = vpop.eup %1657 }
 0x4e2   :  { %v1066_v23 = vmul.f32 %v1658_v48, %v973_v12 }
 0x4e4   :  { %1600 = vmatmul.mubr.msk.f32.vlgmr.msra.gmra.mxu1 %vm85_vm0, %v1066_v23 }
 0x4e5   :  { %v1660_v47 = vpop.eup %1659  ;;  %1602 = vmatprep.mubr.msk.f32.mxu1 %vm1741_vm1, %v1740_v18 }
 0x4e6   :  { %v1067_v4 = vmul.f32 %v1660_v47, %v978_v16 }
 0x4e8   :  { %1603 = vmatmul.mubr.msk.f32.gmra.mxu1 %vm85_vm0, %v1067_v4 }
 0x55f   :  { %v707_v7 = vpop.xlane.xlu1 %706 }
 0x560   :  { %v714_v9 = vmul.f32 %v707_v7, %v699_v5 }
 0x562   :  { %v717_v13 = vsub.f32 %v2231_v44, %v714_v9 }
 0x563   :  { %v713_v41 = vpop.xlane.xlu1 %712 }
 0x564   :  { %720 = vst.msk [vmem:[#allocation7] sm:$0xff] %vm663_vm4, %v717_v13  ;;  %v716_v42 = vmul.f32 %v713_v41, %v701_v17 }
 0x566   :  { %v719_v43 = vsub.f32 %v2223_v40, %v716_v42 }
 0x568   :  { %722 = vst.msk [vmem:[#allocation7 + $0x10] sm:$0xff] %vm663_vm4, %v719_v43 }
 0x5a0   :  { %v1143_v45 = vpop.f32.mrf.mxu0 }
 0x5a1   :  { %v2263_v40 = vadd.f32 %v2212_v11, %v1143_v45 }
 0x5a2   :  { %v1598_v51 = vpop.f32.mrf.mxu0 }
 0x5a4   :  { %v1148_v18 = vpop.f32.mrf.mxu1 }
 0x5a5   :  { %v2255_v53 = vadd.f32 %v2212_v11, %v1148_v18 }
 0x5a6   :  { %v1601_v52 = vpop.f32.mrf.mxu1 }
 0x5a7   :  { %v1159_v55 = vrot.slane %v2255_v53, 4 }
 0x5a8   :  { %v1153_v46 = vpop.f32.mrf.mxu1 }
 0x5a9   :  { %v2258_v54 = vadd.f32 %v2212_v11, %v1153_v46 }
 0x5aa   :  { %v1604_v44 = vpop.f32.mrf.mxu1 }
 0x5ab   :  { %v1160_v56 = vrot.slane %v2258_v54, 4 }
 0x5ad   :  { %v1161_v57 = vsel %vm653_vm2, %v1159_v55, %v1160_v56  ;;  %v1165_v58 = vadd.f32 %v1160_v56, %v2255_v53 }
 0x5ae   :  { %v1164_v49 = vadd.f32 %v1161_v57, %v2263_v40 }
 0x5af   :  { %v1167_v61 = vmul.f32 %v1165_v58, %v1165_v58 }
 0x5b0   :  { %v1166_v59 = vmul.f32 %v1164_v49, %v1164_v49 }
 0x5b1   :  { %v1171_v62 = vsel %vm667_vm3, %v1167_v61, 0.0 }
 0x5b2   :  { %v1168_v60 = vsel %vm663_vm4, %v1166_v59, 0.0 }
 0x5b3   :  { %1169 = vadd.xlane.f32.xlu0 %v1168_v60 }
 0x5b7   :  { %1172 = vadd.xlane.f32.xlu0 %v1171_v62 }
 0x5bb   :  { %709 = vadd.xlane.f32.xlu0 %v708_v0 }
 0x63c   :  { %v1170_v11 = vpop.xlane.xlu0 %1169 }
 0x63d   :  { %1661 = vrsqrt.f32 %v1170_v11  ;;  %vm1176_vm9 = vcmp.eq.f32.partialorder %v1170_v11, inf  ;;  %v1179_v14 = vand.u32 2147483648, %v1170_v11  ;;  %vm1178_vm10 = vcmp.eq.f32.partialorder %v1170_v11, 0.0 }
 0x640   :  { %v1173_v1 = vpop.xlane.xlu0 %1172 }
 0x641   :  { %1663 = vrsqrt.f32 %v1173_v1  ;;  %vm1183_vm11 = vcmp.eq.f32.partialorder %v1173_v1, inf  ;;  %v1186_v24 = vand.u32 2147483648, %v1173_v1  ;;  %vm1185_vm12 = vcmp.eq.f32.partialorder %v1173_v1, 0.0 }
 0x644   :  { %v710_v3 = vpop.xlane.xlu0 %709 }
 0x645   :  { %v715_v6 = vmul.f32 %v710_v3, %v700_v2 }
 0x647   :  { %v718_v8 = vsub.f32 %v2218_v15, %v715_v6 }
 0x649   :  { %721 = vst.msk [vmem:[#allocation7 + $0x8] sm:$0xff] %vm663_vm4, %v718_v8 }
 0x64a   :  { %v1662_v10 = vpop.eup %1661 }
 0x64b   :  { %v1175_v12 = vmul.f32 %v1662_v10, %v1170_v11 }
 0x64d   :  { %v1177_v16 = vsel %vm1176_vm9, %v1170_v11, %v1175_v12 }
 0x64e   :  { %v1664_v19 = vpop.eup %1663  ;;  %v1180_v20 = vsel %vm1178_vm10, %v1179_v14, %v1177_v16 }
 0x64f   :  { %v1188_v21 = vadd.f32 1e-08, %v1180_v20  ;;  %v1182_v22 = vmul.f32 %v1664_v19, %v1173_v1 }
 0x651   :  { %1665 = vrcp.f32 %v1188_v21  ;;  %v1184_v25 = vsel %vm1183_vm11, %v1173_v1, %v1182_v22 }
 0x652   :  { %v1187_v26 = vsel %vm1185_vm12, %v1186_v24, %v1184_v25 }
 0x653   :  { %v1189_v27 = vadd.f32 1e-08, %v1187_v26 }
 0x655   :  { %1667 = vrcp.f32 %v1189_v27 }
 0x65e   :  { %v1666_v15 = vpop.eup %1665 }
 0x65f   :  { %v1192_v28 = vmul.f32 %v1666_v15, %v1164_v49 }
 0x661   :  { %v1205_v29 = vmul.f32 %v1192_v28, %v2263_v40  ;;  %v1196_v33 = vrot.slane %v1192_v28, 4  ;;  %v1202_v48 = vmul.f32 2.0, %v1192_v28 }
 0x662   :  { %v1668_v30 = vpop.eup %1667 }
 0x663   :  { %v1208_v31 = vsel %vm663_vm4, %v1205_v29, 0.0  ;;  %v1193_v32 = vmul.f32 %v1668_v30, %v1165_v58 }
 0x664   :  { %1209 = vadd.xlane.f32.xlu0 %v1208_v31 }
 0x665   :  { %v1201_v34 = vsel %vm653_vm2, %v1193_v32, %v1196_v33  ;;  %v1197_v35 = vrot.slane %v1193_v32, 4 }
 0x666   :  { %v1206_v36 = vmul.f32 %v1201_v34, %v2255_v53  ;;  %v1203_v5 = vmul.f32 2.0, %v1201_v34 }
 0x667   :  { %v1198_v37 = vsel %vm653_vm2, %v1196_v33, %v1197_v35 }
 0x668   :  { %v1211_v38 = vsel %vm663_vm4, %v1206_v36, 0.0  ;;  %v1207_v39 = vmul.f32 %v1198_v37, %v2258_v54  ;;  %v1204_v13 = vmul.f32 2.0, %v1198_v37 }
 0x669   :  { %1212 = vadd.xlane.f32.xlu1 %v1211_v38 }
 0x66a   :  { %v1214_v50 = vsel %vm663_vm4, %v1207_v39, 0.0 }
 0x66b   :  { %1215 = vadd.xlane.f32.xlu0 %v1214_v50 }
 0x6ed   :  { %v1210_v23 = vpop.xlane.xlu0 %1209 }
 0x6ee   :  { %v1217_v47 = vmul.f32 %v1210_v23, %v1202_v48 }
 0x6f0   :  { %v1220_v4 = vsub.f32 %v2263_v40, %v1217_v47 }
 0x6f2   :  { %1224 = vst.msk [vmem:[#allocation7 + $0x18] sm:$0xff] %vm663_vm4, %v1220_v4  ;;  %v1213_v7 = vpop.xlane.xlu1 %1212 }
 0x6f3   :  { %v1218_v9 = vmul.f32 %v1213_v7, %v1203_v5 }
 0x6f4   :  { %v1216_v17 = vpop.xlane.xlu0 %1215 }
 0x6f5   :  { %v1221_v41 = vsub.f32 %v2255_v53, %v1218_v9  ;;  %v1219_v42 = vmul.f32 %v1216_v17, %v1204_v13 }
 0x6f7   :  { %1225 = vst.msk [vmem:[#allocation7 + $0x20] sm:$0xff] %vm663_vm4, %v1221_v41  ;;  %v1222_v43 = vsub.f32 %v2258_v54, %v1219_v42 }
 0x6f9   :  { %1226 = vst.msk [vmem:[#allocation7 + $0x28] sm:$0xff] %vm663_vm4, %v1222_v43 }
 0x6fa   :  { %1720 = shalt.err (!%p1717_p0)
}
 0x6fb   :  { %1238 = dma.vmem_to_hbm [thread:$0]  %s1233_s29, 768, %s2301_s7, [#allocation4], %s1736_s27, %s1736_s27, %s1737_s28  }
 0x6fc   :  { %1733 = dma.done.wait [#allocation4], 768  }
 0x6fd   :  { %1734 = vsyncadd [#allocation4], 4294966528 }
 0x6fe   :  { %1242 = vsyncpa [#allocation3], 1 }
 0x6ff   :  { %1243 = vsyncpa [#allocation6], 1 }
 0x700   :  { %1244 = vsyncpa [#allocation4], 1 }

</bundles_post_ra>
